<compile_context>
chip_gen: v7x
topology: tpu7x:2x2x1
jax: 0.10.0
libtpu: 0.0.40
codegen_flags: <defaults>
</compile_context>

<pallas_src>
import functools

import jax
import jax.numpy as jnp
from jax.experimental import pallas as pl
from jax.experimental.pallas import tpu as pltpu


def _round_up(n, m):
    return ((n + m - 1) // m) * m


def _dft_matrices(n):
    """cos/sin parts of the full n x n DFT matrix F = C - i*S (symmetric)."""
    assert n <= 46340, "int32 phase table would overflow"
    idx = jnp.arange(n, dtype=jnp.int32)
    phase = (idx[:, None] * idx[None, :]) % n          # exact integer phase
    ang = (2.0 * jnp.pi / n) * phase.astype(jnp.float32)
    return jnp.cos(ang), jnp.sin(ang)


def _rdft_matrices(n, n_cols):
    """Hermitian-half DFT matrices along the last axis, shape (n, n_cols).

    Only the first n//2+1 frequency columns are non-zero; each column carries
    its spectrum-duplication weight (1 for DC/Nyquist, 2 otherwise, 0 for the
    padding columns), so the unweighted |.|-sum downstream equals the
    full-spectrum sum exactly.
    """
    assert n <= 46340, "int32 phase table would overflow"
    r = jnp.arange(n, dtype=jnp.int32)
    v = jnp.arange(n_cols, dtype=jnp.int32)
    phase = (r[:, None] * v[None, :]) % n
    ang = (2.0 * jnp.pi / n) * phase.astype(jnp.float32)
    n_half = n // 2 + 1
    weight = jnp.where(v == 0, 1.0, 2.0)
    if n % 2 == 0:
        weight = jnp.where(v == n // 2, 1.0, weight)   # Nyquist bin
    weight = jnp.where(v >= n_half, 0.0, weight).astype(jnp.float32)
    return jnp.cos(ang) * weight[None, :], jnp.sin(ang) * weight[None, :]


def _fft_loss_kernel(x_ref, y_ref, cw_ref, sw_ref, mh1_ref, mh2_ref, out_ref,
                     *, tb, h, w, wr_p, compute_dtype):
    # Fused x-y difference in f32 (single rounding into the MXU compute dtype).
    d = x_ref[...].astype(jnp.float32) - y_ref[...].astype(jnp.float32)   # (tb,h,w)
    d2 = d.reshape(tb * h, w).astype(compute_dtype)

    # Stage 1: rDFT along W over the Hermitian-half columns (weights folded
    # into the matrices).  X = d @ (Cw - i*Sw)  =>  Xr = d @ Cw, Xi = -(d @ Sw).
    xr = jnp.dot(d2, cw_ref[...], preferred_element_type=jnp.float32)     # (tb*h, wr_p)
    p = jnp.dot(d2, sw_ref[...], preferred_element_type=jnp.float32)      # (tb*h, wr_p)

    # Per-slab transpose (XLU slot, overlaps the MXU) so stage 2 is a stacked
    # big-M right-multiplication.  wr_p % 8 == 0 keeps these reshapes
    # layout-preserving.
    xrt = jnp.swapaxes(xr.reshape(tb, h, wr_p), 1, 2).reshape(tb * wr_p, h)
    pt = jnp.swapaxes(p.reshape(tb, h, wr_p), 1, 2).reshape(tb * wr_p, h)
    xrt = xrt.astype(compute_dtype)
    pt = pt.astype(compute_dtype)

    # Stage 2: DFT along H with block matrices Mh1=[Ch|Sh], Mh2=[-Sh|Ch]:
    #   t = Xr^T @ Mh1 + P^T @ Mh2 = [ Re(Y^T) | -Im(Y^T) ]   (sign-free abs)
    t = (jnp.dot(xrt, mh1_ref[...], preferred_element_type=jnp.float32)
         + jnp.dot(pt, mh2_ref[...], preferred_element_type=jnp.float32))  # (tb*wr_p, 2h)

    # Single fused |Re|+|Im| partial sum; normalized in the XLA wrapper.
    out_ref[0] = jnp.sum(jnp.abs(t), keepdims=True)


def fft_loss(x, y, *, use_bf16=True):
    """Pallas TPU implementation of fftLoss.forward (fft2 over last two dims)."""
    assert x.shape == y.shape, (x.shape, y.shape)
    assert x.ndim >= 2
    *lead, h, w = x.shape
    n_slabs = 1
    for d_ in lead:
        n_slabs *= int(d_)
    n_slabs = max(n_slabs, 1)

    xs = x.reshape(n_slabs, h, w)
    ys = y.reshape(n_slabs, h, w)

    compute_dtype = jnp.bfloat16 if use_bf16 else jnp.float32

    # DFT operands.  W stage: Hermitian-half columns padded to a multiple of 8,
    # duplication weights folded in.  H stage: [Ch|Sh] and [-Sh|Ch] block mats.
    wr = w // 2 + 1
    wr_p = max(_round_up(wr, 8), 8)
    cw, sw = _rdft_matrices(w, wr_p)                    # (w, wr_p)
    ch, sh = _dft_matrices(h)                           # (h, h), symmetric
    mh1 = jnp.concatenate([ch, sh], axis=1)             # (h, 2h)
    mh2 = jnp.concatenate([-sh, ch], axis=1)            # (h, 2h)
    cw, sw, mh1, mh2 = tuple(m.astype(compute_dtype) for m in (cw, sw, mh1, mh2))

    # --- TB (slabs per grid step) from a generation-aware VMEM budget --------
    try:
        vmem_cap = int(pltpu.get_tpu_info().vmem_capacity_bytes)
    except Exception:
        vmem_cap = 64 * 1024 * 1024                     # conservative (v7x)
    budget = vmem_cap // 2

    cd = jnp.dtype(compute_dtype).itemsize
    in_bytes = jnp.dtype(x.dtype).itemsize + jnp.dtype(y.dtype).itemsize
    mat_bytes = 2 * cd * (2 * w * wr_p + 4 * h * h)     # 4 matrices, double-buffered
    per_slab = (2 * in_bytes * h * w                    # x/y blocks (double-buffered)
                + (4 + cd) * h * w                      # d (f32) + cast
                + (8 + 2 * cd) * h * wr_p               # xr, p (f32) + casts
                + 8 * h * wr_p                          # xrt, pt (f32 transposes)
                + 8 * h * wr_p)                         # t = [Re | Im] (f32)
    per_slab = int(per_slab * 1.25) + 1                 # relayout / fusion headroom
    tb_max = max(1, (budget - mat_bytes) // per_slab)

    # Keep grid >= 2 so both v7x TensorCores get work on the "parallel" axis;
    # at most one extra ~0.35us grid step on single-TC v5e/v6e.
    tb_cap = n_slabs // 2 if n_slabs >= 2 else 1
    tb_limit = max(1, min(tb_max, tb_cap, n_slabs))
    tb = 1
    for t in range(tb_limit, 0, -1):
        if n_slabs % t == 0:
            tb = t
            break
    grid = n_slabs // tb

    working_set = tb * per_slab + mat_bytes
    vmem_limit = int(min(vmem_cap * 0.9, max(32 * 1024 * 1024, 2 * working_set)))

    kernel = functools.partial(_fft_loss_kernel, tb=tb, h=h, w=w, wr_p=wr_p,
                               compute_dtype=compute_dtype)

    partials = pl.pallas_call(
        kernel,
        out_shape=jax.ShapeDtypeStruct((grid, 1, 1), jnp.float32),
        grid_spec=pltpu.PrefetchScalarGridSpec(
            num_scalar_prefetch=0,
            grid=(grid,),
            in_specs=[
                pl.BlockSpec((tb, h, w), lambda i: (i, 0, 0)),   # x slabs
                pl.BlockSpec((tb, h, w), lambda i: (i, 0, 0)),   # y slabs
                pl.BlockSpec((w, wr_p), lambda i: (0, 0)),        # Cw (half, weighted)
                pl.BlockSpec((w, wr_p), lambda i: (0, 0)),        # Sw (half, weighted)
                pl.BlockSpec((h, 2 * h), lambda i: (0, 0)),       # [Ch | Sh]
                pl.BlockSpec((h, 2 * h), lambda i: (0, 0)),       # [-Sh | Ch]
            ],
            # One partial per grid step -> no cross-step accumulator; the grid
            # axis can be sharded across TensorCores (v7x).
            out_specs=pl.BlockSpec((1, 1, 1), lambda i: (i, 0, 0)),
        ),
        compiler_params=pltpu.CompilerParams(
            dimension_semantics=("parallel",),
            vmem_limit_bytes=vmem_limit,
        ),
    )(xs, ys, cw, sw, mh1, mh2)

    total_n = float(n_slabs) * float(h) * float(w)
    return jnp.sum(partials) / total_n


def fft_loss_ref(x, y):
    diff = jnp.fft.fft2(x.astype(jnp.float32)) - jnp.fft.fft2(y.astype(jnp.float32))
    return jnp.mean(jnp.abs(diff.imag)) + jnp.mean(jnp.abs(diff.real))


if __name__ == "__main__":
    key = jax.random.PRNGKey(0)
    kx, ky = jax.random.split(key)
    shape = (2, 4, 16, 16)  # NCHW
    x = jax.random.normal(kx, shape, dtype=jnp.float32)
    y = jax.random.normal(ky, shape, dtype=jnp.float32)

    loss = fft_loss(x, y)
    jax.block_until_ready(loss)

    ref = fft_loss_ref(x, y)
    # Slightly relaxed tolerance: matmul operands are bf16 (f32 accumulation).
    assert jnp.allclose(loss, ref, rtol=2e-3, atol=2e-3), (loss, ref)

    print("KERNEL_OK")
</pallas_src>

<mosaic_0001>
module attributes {stable_mosaic.version = 11 : i64} {
  func.func @_fft_loss_kernel(%arg0: i32, %arg1: memref<4x16x16xf32, #tpu.memory_space<vmem>>, %arg2: memref<4x16x16xf32, #tpu.memory_space<vmem>>, %arg3: memref<16x16xbf16, #tpu.memory_space<vmem>>, %arg4: memref<16x16xbf16, #tpu.memory_space<vmem>>, %arg5: memref<16x32xbf16, #tpu.memory_space<vmem>>, %arg6: memref<16x32xbf16, #tpu.memory_space<vmem>>, %arg7: memref<1x1x1xf32, #tpu.memory_space<vmem>>) attributes {dimension_semantics = [#tpu.dimension_semantics<parallel>], iteration_bounds = array<i64: 2>, scalar_prefetch = 0 : i64, scratch_operands = 0 : i64, tpu.core_type = #tpu.core_type<tc>, window_params = [{transform_indices = @transform_0, window_bounds = array<i64: 4, 16, 16>}, {transform_indices = @transform_1, window_bounds = array<i64: 4, 16, 16>}, {pipeline_mode = #tpu.pipeline_mode<synchronous>, transform_indices = @transform_2, window_bounds = array<i64: 16, 16>}, {pipeline_mode = #tpu.pipeline_mode<synchronous>, transform_indices = @transform_3, window_bounds = array<i64: 16, 16>}, {pipeline_mode = #tpu.pipeline_mode<synchronous>, transform_indices = @transform_4, window_bounds = array<i64: 16, 32>}, {pipeline_mode = #tpu.pipeline_mode<synchronous>, transform_indices = @transform_5, window_bounds = array<i64: 16, 32>}, {transform_indices = @transform_6, window_bounds = array<i64: 1, 1, 1>}]} {
    %c0 = arith.constant 0 : index
    %c0_0 = arith.constant 0 : index
    %c0_1 = arith.constant 0 : index
    %0 = vector.load %arg1[%c0, %c0_0, %c0_1] : memref<4x16x16xf32, #tpu.memory_space<vmem>>, vector<4x16x16xf32>
    %c0_2 = arith.constant 0 : index
    %c0_3 = arith.constant 0 : index
    %c0_4 = arith.constant 0 : index
    %1 = vector.load %arg2[%c0_2, %c0_3, %c0_4] : memref<4x16x16xf32, #tpu.memory_space<vmem>>, vector<4x16x16xf32>
    %2 = arith.subf %0, %1 : vector<4x16x16xf32>
    %3 = vector.shape_cast %2 : vector<4x16x16xf32> to vector<64x16xf32>
    %4 = arith.truncf %3 : vector<64x16xf32> to vector<64x16xbf16>
    %c0_5 = arith.constant 0 : index
    %c0_6 = arith.constant 0 : index
    %5 = vector.load %arg3[%c0_5, %c0_6] : memref<16x16xbf16, #tpu.memory_space<vmem>>, vector<16x16xbf16>
    %cst = arith.constant dense<0.000000e+00> : vector<64x16xf32>
    %6 = tpu.matmul %4, %5, %cst {dimension_numbers = #tpu.dot_dimension_numbers<[1], [0], [0], [1], [0, 0, 1, 1], [], []>} : vector<64x16xbf16>, vector<16x16xbf16>, vector<64x16xf32> -> vector<64x16xf32>
    %c0_7 = arith.constant 0 : index
    %c0_8 = arith.constant 0 : index
    %7 = vector.load %arg4[%c0_7, %c0_8] : memref<16x16xbf16, #tpu.memory_space<vmem>>, vector<16x16xbf16>
    %cst_9 = arith.constant dense<0.000000e+00> : vector<64x16xf32>
    %8 = tpu.matmul %4, %7, %cst_9 {dimension_numbers = #tpu.dot_dimension_numbers<[1], [0], [0], [1], [0, 0, 1, 1], [], []>} : vector<64x16xbf16>, vector<16x16xbf16>, vector<64x16xf32> -> vector<64x16xf32>
    %9 = vector.shape_cast %6 : vector<64x16xf32> to vector<4x16x16xf32>
    %10 = tpu.transpose %9, [0, 2, 1] : vector<4x16x16xf32> -> vector<4x16x16xf32>
    %11 = vector.shape_cast %10 : vector<4x16x16xf32> to vector<64x16xf32>
    %12 = vector.shape_cast %8 : vector<64x16xf32> to vector<4x16x16xf32>
    %13 = tpu.transpose %12, [0, 2, 1] : vector<4x16x16xf32> -> vector<4x16x16xf32>
    %14 = vector.shape_cast %13 : vector<4x16x16xf32> to vector<64x16xf32>
    %15 = arith.truncf %11 : vector<64x16xf32> to vector<64x16xbf16>
    %16 = arith.truncf %14 : vector<64x16xf32> to vector<64x16xbf16>
    %c0_10 = arith.constant 0 : index
    %c0_11 = arith.constant 0 : index
    %17 = vector.load %arg5[%c0_10, %c0_11] : memref<16x32xbf16, #tpu.memory_space<vmem>>, vector<16x32xbf16>
    %cst_12 = arith.constant dense<0.000000e+00> : vector<64x32xf32>
    %18 = tpu.matmul %15, %17, %cst_12 {dimension_numbers = #tpu.dot_dimension_numbers<[1], [0], [0], [1], [0, 0, 1, 1], [], []>} : vector<64x16xbf16>, vector<16x32xbf16>, vector<64x32xf32> -> vector<64x32xf32>
    %c0_13 = arith.constant 0 : index
    %c0_14 = arith.constant 0 : index
    %19 = vector.load %arg6[%c0_13, %c0_14] : memref<16x32xbf16, #tpu.memory_space<vmem>>, vector<16x32xbf16>
    %cst_15 = arith.constant dense<0.000000e+00> : vector<64x32xf32>
    %20 = tpu.matmul %16, %19, %cst_15 {dimension_numbers = #tpu.dot_dimension_numbers<[1], [0], [0], [1], [0, 0, 1, 1], [], []>} : vector<64x16xbf16>, vector<16x32xbf16>, vector<64x32xf32> -> vector<64x32xf32>
    %21 = arith.addf %18, %20 : vector<64x32xf32>
    %22 = math.absf %21 : vector<64x32xf32>
    %23 = vector.shape_cast %22 : vector<64x32xf32> to vector<1x64x32xf32>
    %cst_16 = arith.constant dense<0.000000e+00> : vector<1xf32>
    %24 = vector.multi_reduction <add>, %23, %cst_16 [1, 2] : vector<1x64x32xf32> to vector<1xf32>
    %25 = vector.shape_cast %24 : vector<1xf32> to vector<1x1x1xf32>
    %26 = vector.extract %25[0, 0, 0] : f32 from vector<1x1x1xf32>
    %27 = vector.broadcast %26 : f32 to vector<1x1xf32>
    %c0_17 = arith.constant 0 : index
    %c0_18 = arith.constant 0 : index
    %c0_19 = arith.constant 0 : index
    %28 = vector.load %arg7[%c0_17, %c0_18, %c0_19] : memref<1x1x1xf32, #tpu.memory_space<vmem>>, vector<1x1x1xf32>
    %29 = vector.shape_cast %28 : vector<1x1x1xf32> to vector<1x1xf32>
    %30 = vector.shape_cast %27 : vector<1x1xf32> to vector<1x1x1xf32>
    tpu.vector_store %arg7[%c0_17, %c0_18, %c0_19], %30 {strides = array<i32>} : memref<1x1x1xf32, #tpu.memory_space<vmem>>, vector<1x1x1xf32>,
    return
  }
  func.func @transform_0(%arg0: i32) -> (i32, i32, i32) {
    %c0_i32 = arith.constant 0 : i32
    %c0_i32_0 = arith.constant 0 : i32
    %c0_i32_1 = arith.constant 0 : i32
    return %arg0, %c0_i32, %c0_i32_0 : i32, i32, i32
  }
  func.func @transform_1(%arg0: i32) -> (i32, i32, i32) {
    %c0_i32 = arith.constant 0 : i32
    %c0_i32_0 = arith.constant 0 : i32
    %c0_i32_1 = arith.constant 0 : i32
    return %arg0, %c0_i32, %c0_i32_0 : i32, i32, i32
  }
  func.func @transform_2(%arg0: i32) -> (i32, i32) {
    %c0_i32 = arith.constant 0 : i32
    %c0_i32_0 = arith.constant 0 : i32
    %c0_i32_1 = arith.constant 0 : i32
    return %c0_i32, %c0_i32_0 : i32, i32
  }
  func.func @transform_3(%arg0: i32) -> (i32, i32) {
    %c0_i32 = arith.constant 0 : i32
    %c0_i32_0 = arith.constant 0 : i32
    %c0_i32_1 = arith.constant 0 : i32
    return %c0_i32, %c0_i32_0 : i32, i32
  }
  func.func @transform_4(%arg0: i32) -> (i32, i32) {
    %c0_i32 = arith.constant 0 : i32
    %c0_i32_0 = arith.constant 0 : i32
    %c0_i32_1 = arith.constant 0 : i32
    return %c0_i32, %c0_i32_0 : i32, i32
  }
  func.func @transform_5(%arg0: i32) -> (i32, i32) {
    %c0_i32 = arith.constant 0 : i32
    %c0_i32_0 = arith.constant 0 : i32
    %c0_i32_1 = arith.constant 0 : i32
    return %c0_i32, %c0_i32_0 : i32, i32
  }
  func.func @transform_6(%arg0: i32) -> (i32, i32, i32) {
    %c0_i32 = arith.constant 0 : i32
    %c0_i32_0 = arith.constant 0 : i32
    %c0_i32_1 = arith.constant 0 : i32
    return %arg0, %c0_i32, %c0_i32_0 : i32, i32, i32
  }
}

</mosaic_0001>

<bundles_post_ra>
// kernel: tpu_custom_call.1
= control target key start
LH: loop header
LB: loop body
LE: loop exit
PB: predicated region body
PF: predicated region fallthrough
CT: control target
= control target key end

     0   :  { %11 = vsyncpa [#allocation3], 0  ;;  %s1833_s0 = inlined_call_operand.hbm [shape: f32[8,16,16], index: 0, kind: input, shape index: {}]   ;;  %s1834_s1 = inlined_call_operand.hbm [shape: f32[8,16,16], index: 1, kind: input, shape index: {}]   ;;  %s1835_s2 = inlined_call_operand.hbm [shape: bf16[16,16], index: 2, kind: input, shape index: {}]   ;;  %s1836_s3 = inlined_call_operand.vmem [shape: bf16[16,16], index: 3, kind: input, shape index: {}]   ;;  %s1837_s4 = inlined_call_operand.hbm [shape: bf16[16,32], index: 4, kind: input, shape index: {}]   ;;  %s1838_s5 = inlined_call_operand.vmem [shape: bf16[16,32], index: 5, kind: input, shape index: {}]   ;;  %s1839_s6 = inlined_call_operand.vmem [shape: f32[2,1,1], index: 6, kind: output, shape index: {}]  }
   0x1   :  { %13 = vsyncpa [#allocation3 + $0x1], 0 }
   0x2   :  { %14 = vsyncpa [#allocation5], 0 }
   0x3   :  { %16 = vsyncpa [#allocation5 + $0x1], 0 }
   0x4   :  { %17 = vsyncpa [#allocation8], 0  ;;  %s1551_s21 = smov 0   ;;  %s1553_s22 = smov 0  }
   0x5   :  { %s1555_s23 = smov 0   ;;  %s1557_s24 = smov 0  }
   0x6 LB: > { %s1570_s25 = sadd.s32 4294967295, %s1506_s24   ;;  %p43_p0 = scmp.ne.s32.totalorder %s1498_s22, %s1494_s21  ;;  %s1506_s24 = sphi %s1557_s24, %s1856_s24   ;;  %s1502_s23 = sphi %s1555_s23, %s1855_s23   ;;  %s1498_s22 = sphi %s1553_s22, %s1854_s22   ;;  %s1494_s21 = sphi %s1551_s21, %s1853_s21  }
   0x7   : > { %p1840_p1 = scmp.eq.s32.totalorder %s1570_s25, 0  ;;  %p1101_p2 = scmp.ge.s32.totalorder %s1506_s24, 1 }
   0x8   : > { %p190_p3 = scmp.lt.s32.totalorder %s1506_s24, 3  ;;  %s1508_s28 = smov [#allocation6]  }
   0x9   : > { %p1578_p4 = por %p1840_p1, %p43_p0  ;;  %s202_s29 = sshll.u32 %s1508_s28, 4  ;;  %s203_s29 = int_to_ptr.vmem [resolvable:$true] %s202_s29 }
   0xa   : > { %p1582_p5 = pnand %p1101_p2, %p190_p3  ;;  %s1509_s7 = smov [#allocation7]  }
   0xb   : > { %s1843_s26 = scalar_select %p1578_p4, 1, 0 }
   0xc   : > { %s1844_s27 = scalar_select %p1582_p5, 1, 0 }
   0xd   : > { %p1226_p6 = pneg %p1582_p5  ;;  %s218_s8 = sshll.u32 %s1509_s7, 4  ;;  %s1594_s8 = int_to_ptr.vmem [resolvable:$true] %s218_s8 }
   0xe   : > { %s1344_s11 = scalar_lea.hbm %s1835_s2, 128 }
   0xf   : > { %p1590_p7 = pnand %p1226_p6, %p1840_p1  ;;  %p1345_p8 = scmp.ne.s32.totalorder %s1835_s2, %s1344_s11 }
  0x10   : > { %p1351_p12 = scmp.lt.u32.totalorder %s1344_s11, %s1835_s2 }
  0x11   : > { %p1346_p9 = pneg %p1590_p7 }
  0x13   : > { %p1347_p10 = pnand %p1346_p9, %p1345_p8 }
  0x15   : > { %p1348_p11 = pneg %p1347_p10 }
  0x17   : > { %p1353_p13 = pnand %p1351_p12, %p1348_p11 }
  0x19   : > { %1356 = shalt.err (!%p1353_p13)
}
  0x1a   : > { %s1357_s16 = scalar_lea.vmem %s203_s29, 128  ;;  %p1365_p6 = scmp.lt.s32.totalorder %s203_s29, %s203_s29 }
  0x1b   : > { %p1358_p0 = scmp.ne.s32.totalorder %s203_s29, %s1357_s16  ;;  %p1366_p1 = scmp.lt.s32.totalorder %s1357_s16, %s1357_s16 }
  0x1d   : > { %p1360_p2 = pnand %p1358_p0, %p1346_p9  ;;  %p1367_p4 = por %p1366_p1, %p1365_p6 }
  0x1f   : > { %p1361_p3 = pneg %p1360_p2 }
  0x21   : > { %p1368_p5 = pnand %p1367_p4, %p1361_p3 }
  0x23   : > { %1371 = shalt.err (!%p1368_p5)
}
  0x24   : > { %s1510_s17 = smov 64   ;;  %s1511_s18 = smov 4  }
  0x25   : > { %1229 = dma.hbm_to_vmem [thread:$0]  (!%p1590_p7), %s1835_s2, 128, %s203_s29, [#allocation5], %s1510_s17, %s1510_s17, %s1511_s18  }
  0x26   : > { %s1372_s7 = scalar_lea.hbm %s1837_s4, 128 }
  0x27   : > { %p1373_p8 = scmp.ne.s32.totalorder %s1837_s4, %s1372_s7  ;;  %p1379_p5 = scmp.lt.u32.totalorder %s1372_s7, %s1837_s4 }
  0x29   : > { %p1375_p1 = pnand %p1373_p8, %p1346_p9 }
  0x2b   : > { %p1376_p4 = pneg %p1375_p1 }
  0x2d   : > { %p1381_p10 = pnand %p1379_p5, %p1376_p4 }
  0x2f   : > { %1384 = shalt.err (!%p1381_p10)
}
  0x30   : > { %s1385_s29 = scalar_lea.vmem %s1594_s8, 128  ;;  %p1393_p0 = scmp.lt.s32.totalorder %s1594_s8, %s1594_s8 }
  0x31   : > { %p1386_p11 = scmp.ne.s32.totalorder %s1594_s8, %s1385_s29  ;;  %p1394_p2 = scmp.lt.s32.totalorder %s1385_s29, %s1385_s29 }
  0x33   : > { %p1388_p12 = pnand %p1386_p11, %p1346_p9  ;;  %p1395_p3 = por %p1394_p2, %p1393_p0 }
  0x35   : > { %p1389_p13 = pneg %p1388_p12 }
  0x37   : > { %p1396_p6 = pnand %p1395_p3, %p1389_p13 }
  0x39   : > { %1399 = shalt.err (!%p1396_p6)
}
  0x3a   : > { %1232 = dma.hbm_to_vmem [thread:$0]  (!%p1590_p7), %s1837_s4, 128, %s1594_s8, [#allocation8], %s1510_s17, %s1510_s17, %s1511_s18  }
  0x3b   : > { %s1644_s15 = sadd.s32 1, %s1506_s24   ;;  %s30_s30 = sadd.s32 1, %s1502_s23 }
  0x3c   : > { %s27_s16 = ssub.s32 %s1506_s24, %s1644_s15  ;;  %p37_p9 = scmp.ne.s32.totalorder %s1502_s23, %s1498_s22 }
  0x3d   : > { %p28_p8 = scmp.eq.s32.totalorder %s27_s16, 0  ;;  %p38_p1 = scmp.eq.s32.totalorder %s1506_s24, 0 }
  0x3e   : > { %p1242_p4 = scmp.lt.s32.totalorder %s1506_s24, 2  ;;  %s235_s19 = sand.u32 1, %s1502_s23  }
  0x3f   : > { %s1655_s20 = scalar_select %p28_p8, %s1502_s23, %s30_s30  }
  0x40   : > { %p39_p5 = por %p38_p1, %p37_p9  ;;  %s1657_s21 = sshll.u32 %s235_s19, 6 }
  0x41   : > { %s1141_s28 = sshll.u32 %s1506_s24, 10  ;;  %s239_s18 = scalar_lea.vmem [#allocation2], %s1657_s21 }
  0x42   : > { %s1665_s17 = scalar_lea.hbm %s1833_s0, %s1141_s28  ;;  %s247_s9 = sshll.u32 %s239_s18, 4  ;;  %s1672_s9 = int_to_ptr.vmem [resolvable:$true] %s247_s9 }
  0x43   : > { %p1668_p7 = pnand %p1242_p4, %p39_p5  ;;  %s1674_s11 = scalar_lea.sflag [#allocation3], %s235_s19 }
  0x44   : > { %s1400_s12 = scalar_lea.hbm %s1665_s17, 1024  ;;  %s1405_s14 = scalar_lea.hbm %s1833_s0, 2048 }
  0x45   : > { %p1401_p10 = scmp.ne.s32.totalorder %s1665_s17, %s1400_s12  ;;  %p1402_p11 = pneg %p1668_p7 }
  0x46   : > { %p1406_p0 = scmp.lt.u32.totalorder %s1665_s17, %s1833_s0  ;;  %p1407_p2 = scmp.lt.u32.totalorder %s1405_s14, %s1400_s12 }
  0x47   : > { %p1403_p12 = pnand %p1402_p11, %p1401_p10  ;;  %p1409_p6 = scmp.lt.u32.totalorder %s1400_s12, %s1665_s17 }
  0x48   : > { %p1408_p3 = por %p1407_p2, %p1406_p0 }
  0x49   : > { %p1404_p13 = pneg %p1403_p12 }
  0x4a   : > { %p1410_p9 = por %p1409_p6, %p1408_p3 }
  0x4c   : > { %p1411_p8 = pnand %p1410_p9, %p1404_p13 }
  0x4e   : > { %1414 = shalt.err (!%p1411_p8)
}
  0x4f   : > { %s1415_s19 = scalar_lea.vmem %s1672_s9, 1024  ;;  %s1512_s7 = smov [#allocation2]  }
  0x50   : > { %p1416_p1 = scmp.ne.s32.totalorder %s1672_s9, %s1415_s19  ;;  %s1420_s8 = sshll.u32 %s1512_s7, 4  ;;  %s1421_s8 = int_to_ptr.vmem [resolvable:$false] %s1420_s8 }
  0x51   : > { %s1422_s18 = scalar_lea.vmem %s1421_s8, 2048  ;;  %p1423_p10 = scmp.lt.s32.totalorder %s1672_s9, %s1421_s8 }
  0x52   : > { %p1418_p4 = pnand %p1416_p1, %p1402_p11  ;;  %p1424_p12 = scmp.lt.s32.totalorder %s1422_s18, %s1415_s19 }
  0x54   : > { %p1419_p5 = pneg %p1418_p4  ;;  %p1425_p0 = por %p1424_p12, %p1423_p10 }
  0x56   : > { %p1426_p2 = pnand %p1425_p0, %p1419_p5 }
  0x58   : > { %1429 = shalt.err (!%p1426_p2)
}
  0x59   : > { %s1513_s12 = smov 128   ;;  %s1514_s29 = smov 8  }
  0x5a   : > { %1236 = dma.hbm_to_vmem [thread:$0]  (!%p1668_p7), %s1665_s17, 1024, %s1672_s9, %s1674_s11, %s1513_s12, %s1513_s12, %s1514_s29  }
  0x5b   : > { %s1710_s30 = scalar_lea.hbm %s1834_s1, %s1141_s28  ;;  %s261_s16 = scalar_lea.vmem [#allocation4], %s1657_s21 }
  0x5c   : > { %s269_s19 = sshll.u32 %s261_s16, 4  ;;  %s257_s7 = sand.u32 1, %s1506_s24   ;;  %s1714_s19 = int_to_ptr.vmem [resolvable:$true] %s269_s19 }
  0x5d   : > { %s1716_s8 = scalar_lea.sflag [#allocation5], %s257_s7  ;;  %s1430_s18 = scalar_lea.hbm %s1710_s30, 1024 }
  0x5e   : > { %p1431_p13 = scmp.ne.s32.totalorder %s1710_s30, %s1430_s18  ;;  %s1435_s9 = scalar_lea.hbm %s1834_s1, 2048 }
  0x5f   : > { %p1436_p9 = scmp.lt.u32.totalorder %s1710_s30, %s1834_s1  ;;  %p1437_p8 = scmp.lt.u32.totalorder %s1435_s9, %s1430_s18 }
  0x60   : > { %p1433_p3 = pnand %p1431_p13, %p1402_p11  ;;  %p1439_p4 = scmp.lt.u32.totalorder %s1430_s18, %s1710_s30 }
  0x61   : > { %p1438_p1 = por %p1437_p8, %p1436_p9 }
  0x62   : > { %p1434_p6 = pneg %p1433_p3 }
  0x63   : > { %p1440_p5 = por %p1439_p4, %p1438_p1 }
  0x65   : > { %p1441_p10 = pnand %p1440_p5, %p1434_p6 }
  0x67   : > { %1444 = shalt.err (!%p1441_p10)
}
  0x68   : > { %s1445_s24 = scalar_lea.vmem %s1714_s19, 1024  ;;  %s1515_s21 = smov [#allocation4]  }
  0x69   : > { %p1446_p12 = scmp.ne.s32.totalorder %s1714_s19, %s1445_s24  ;;  %s1450_s14 = sshll.u32 %s1515_s21, 4  ;;  %s1451_s14 = int_to_ptr.vmem [resolvable:$false] %s1450_s14 }
  0x6a   : > { %s1452_s16 = scalar_lea.vmem %s1451_s14, 2048  ;;  %p1453_p13 = scmp.lt.s32.totalorder %s1714_s19, %s1451_s14 }
  0x6b   : > { %p1448_p0 = pnand %p1446_p12, %p1402_p11  ;;  %p1454_p3 = scmp.lt.s32.totalorder %s1452_s16, %s1445_s24 }
  0x6d   : > { %p1449_p2 = pneg %p1448_p0  ;;  %p1455_p9 = por %p1454_p3, %p1453_p13 }
  0x6f   : > { %p1456_p8 = pnand %p1455_p9, %p1449_p2 }
  0x71   : > { %1459 = shalt.err (!%p1456_p8)
}
  0x72   : > { %1239 = dma.hbm_to_vmem [thread:$0]  (!%p1668_p7), %s1710_s30, 1024, %s1714_s19, %s1716_s8, %s1513_s12, %s1513_s12, %s1514_s29  }
  0x73   : > { %p1847_p11 = scmp.ne.s32.totalorder %s1844_s27, 0 }
  0x74   : > { %s283_s7 = sand.u32 (!%p1847_p11), 1, %s1498_s22   ;;  %p1848_p6 = scmp.ne.s32.totalorder (!%p1847_p11), %s1843_s26, 0 }
  0x75   : > { %281 = sbr.rel (%p1847_p11) target bundleno = 966 (0x3c6), region = 44  ;;  %s1114_s18 = sshll.u32 (!%p1847_p11), %s283_s7, 6 }
  0x76   : > { %s284_s17 = scalar_lea.sflag (!%p1847_p11), [#allocation3], %s283_s7  ;;  %s1748_s28 = scalar_lea.vmem (!%p1847_p11), [#allocation2], %s1114_s18 }
  0x7c   : > { %1477 = dma.done.wait (%p1848_p6), %s284_s17, 1024  }
  0x7d   : > { %1479 = vsyncadd (%p1848_p6), %s284_s17, 4294966272  ;;  %s292_s10 = sand.u32 1, %s1570_s25   ;;  %s1755_s12 = scalar_lea.vmem [#allocation4], %s1114_s18 }
  0x7e   : > { %s293_s9 = scalar_lea.sflag [#allocation5], %s292_s10 }
  0x7f   : > { %1481 = dma.done.wait (%p1848_p6), %s293_s9, 1024  }
  0x80   : > { %1483 = vsyncadd (%p1848_p6), %s293_s9, 4294966272  ;;  %p1849_p7 = scmp.eq.s32.totalorder %s1570_s25, 0 }
  0x82   : > { %1485 = dma.done.wait (%p1849_p7), [#allocation5], 128   ;;  %p1850_p1 = pmov %p1849_p7 }
  0x84   : > { %1487 = vsyncadd (%p1850_p1), [#allocation5], 4294967168  ;;  %p1851_p4 = pmov %p1850_p1 }
  0x85   : > { %p1852_p5 = pmov %p1850_p1 }
  0x86   : > { %1489 = dma.done.wait (%p1851_p4), [#allocation8], 128  }
  0x87   : > { %1491 = vsyncadd (%p1852_p5), [#allocation8], 4294967168  ;;  %v1340_v0 = vld [vmem:[#allocation6] sm:$0xff]   ;;  %v343_v2 = vld [vmem:[%s1748_s28 + $0x8] sm:$0xff]  ;;  %vm378_vm0 = vcmask 130048   ;;  %vm971_vm1 = vcmask 261120  }
  0x88   : > { %v342_v1 = vld [vmem:[%s1748_s28] sm:$0xff]  ;;  %1164 = vmatprep.subr.bf16.mxu1 %v1340_v0  ;;  %v351_v4 = vld [vmem:[%s1755_s12 + $0x8] sm:$0xff]  ;;  %v344_v6 = vld [vmem:[%s1748_s28 + $0x10] sm:$0xff]  ;;  %p338_p10 = scmp.lt.s32.totalorder %s1570_s25, 1  ;;  %vm997_vm2 = vcmask 0  }
  0x89   : > { %v350_v3 = vld [vmem:[%s1755_s12] sm:$0xff]  ;;  %v345_v7 = vld [vmem:[%s1748_s28 + $0x18] sm:$0xff]  ;;  %1165 = vmatpush3.bf16.msra.mxu1 %v1340_v0  ;;  %v359_v8 = vsub.f32 %v343_v2, %v351_v4  ;;  %v352_v9 = vld [vmem:[%s1755_s12 + $0x10] sm:$0xff] }
  0x8a   : > { %v358_v5 = vsub.f32 %v342_v1, %v350_v3  ;;  %v353_v10 = vld [vmem:[%s1755_s12 + $0x18] sm:$0xff]  ;;  %v360_v11 = vsub.f32 %v344_v6, %v352_v9  ;;  %v1341_v13 = vld [vmem:[%s1836_s3] sm:$0xff]   ;;  %v347_v16 = vld [vmem:[%s1748_s28 + $0x28] sm:$0xff]  ;;  %s1858_s25 = smov (!%p338_p10, %s1570_s25), 1 }
  0x8b   : > { %v361_v12 = vsub.f32 %v345_v7, %v353_v10  ;;  %v346_v14 = vld [vmem:[%s1748_s28 + $0x20] sm:$0xff]  ;;  %v355_v18 = vld [vmem:[%s1755_s12 + $0x28] sm:$0xff]  ;;  %1174 = vmatprep.subr.bf16.mxu1 %v1341_v13  ;;  %v348_v22 = vld [vmem:[%s1748_s28 + $0x30] sm:$0xff]  ;;  %s340_s11 = scalar_lea.vmem %s1839_s6, %s1858_s25 }
  0x8c   : > { %v366_v15 = vpack.c.bf16 %v359_v8, %v358_v5  ;;  %v354_v17 = vld [vmem:[%s1755_s12 + $0x20] sm:$0xff]  ;;  %v363_v21 = vsub.f32 %v347_v16, %v355_v18  ;;  %v349_v23 = vld [vmem:[%s1748_s28 + $0x38] sm:$0xff]  ;;  %v356_v24 = vld [vmem:[%s1755_s12 + $0x30] sm:$0xff] }
  0x8d   : > { %v367_v19 = vpack.c.bf16 %v361_v12, %v360_v11  ;;  %v362_v20 = vsub.f32 %v346_v14, %v354_v17  ;;  %v357_v25 = vld [vmem:[%s1755_s12 + $0x38] sm:$0xff]  ;;  %v364_v27 = vsub.f32 %v348_v22, %v356_v24  ;;  %v1342_v49 = vld [vmem:[%s1838_s5] sm:$0xff]   ;;  %v1343_v55 = vld [vmem:[#allocation7] sm:$0xff]  }
  0x8e   : > { %1166 = vmatprep.mubr.msk.bf16.mxu1 %vm378_vm0, %v366_v15  ;;  %v365_v28 = vsub.f32 %v349_v23, %v357_v25  ;;  %1184 = vmatprep.subr.bf16.mxu0 %v1342_v49 }
  0x8f   : > { %1167 = vmatmul.mubr.msk.bf16.vlgmr.msra.gmra.mrb[0].mxu1 %vm378_vm0, %v367_v19  ;;  %v368_v26 = vpack.c.bf16 %v363_v21, %v362_v20  ;;  %1185 = vmatpush3.bf16.msra.mxu0 %v1342_v49 }
  0x90   : > { %1175 = vmatpush3.bf16.msra.mxu1 %v1341_v13  ;;  %v369_v29 = vpack.c.bf16 %v365_v28, %v364_v27  ;;  %1194 = vmatprep.subr.bf16.mxu0 %v1343_v55 }
  0x91   : > { %1170 = vmatprep.mubr.msk.bf16.mxu1 %vm378_vm0, %v368_v26 }
  0x97   : > { %1171 = vmatmul.mubr.msk.bf16.gmra.mrb[4].mxu1 %vm378_vm0, %v369_v29 }
  0x98   : > { %1176 = vmatprep.mubr.msk.bf16.mxu1 %vm378_vm0, %v366_v15 }
  0x9f   : > { %1177 = vmatmul.mubr.msk.bf16.vlgmr.msra.gmra.mrb[8].mxu1 %vm378_vm0, %v367_v19 }
  0xa0   : > { %1180 = vmatprep.mubr.msk.bf16.mxu1 %vm378_vm0, %v368_v26 }
  0xa7   : > { %1181 = vmatmul.mubr.msk.bf16.gmra.mrb[12].mxu1 %vm378_vm0, %v369_v29 }
 0x162   : > { %v1168_v30 = vpop.f32.mrb[0].mxu1 }
 0x163   : > { %v425_v31 = vpop.f32.mrb[1].mxu1 }
 0x164   : > { %v1312_v32 = vpack.i.bf16 %v1168_v30, %v425_v31  ;;  %v1169_v33 = vpop.f32.mrb[2].mxu1 }
 0x165   : > { %v428_v34 = vpop.f32.mrb[3].mxu1 }
 0x166   : > { %v1314_v35 = vpack.i.bf16 %v1169_v33, %v428_v34 }
 0x16a   : > { %v1172_v36 = vpop.f32.mrb[4].mxu1 }
 0x16b   : > { %v441_v37 = vpop.f32.mrb[5].mxu1 }
 0x16c   : > { %v1326_v38 = vpack.i.bf16 %v1172_v36, %v441_v37  ;;  %v1173_v39 = vpop.f32.mrb[6].mxu1 }
 0x16d   : > { %v444_v40 = vpop.f32.mrb[7].mxu1 }
 0x16e   : > { %v1328_v41 = vpack.i.bf16 %v1173_v39, %v444_v40 }
 0x172   : > { %v1178_v42 = vpop.f32.mrb[8].mxu1 }
 0x173   : > { %v498_v43 = vpop.f32.mrb[9].mxu1 }
 0x174   : > { %v1179_v44 = vpop.f32.mrb[10].mxu1  ;;  %v1284_v45 = vpack.i.bf16 %v1178_v42, %v498_v43 }
 0x175   : > { %v501_v46 = vpop.f32.mrb[11].mxu1 }
 0x176   : > { %v1286_v47 = vpack.i.bf16 %v1179_v44, %v501_v46  ;;  %1285 = vxpose.xlu0.b32.start [1/2] (short) (narrow) %v1284_v45, 16 }
 0x17a   : > { %1287 = vxpose.xlu0.b32.end [2/2] (short) (narrow) %v1286_v47, 16  ;;  %v1182_v48 = vpop.f32.mrb[12].mxu1 }
 0x17b   : > { %v514_v50 = vpop.f32.mrb[13].mxu1 }
 0x17c   : > { %v1183_v51 = vpop.f32.mrb[14].mxu1  ;;  %v1298_v52 = vpack.i.bf16 %v1182_v48, %v514_v50 }
 0x17d   : > { %v517_v53 = vpop.f32.mrb[15].mxu1 }
 0x17e   : > { %v1300_v54 = vpack.i.bf16 %v1183_v51, %v517_v53  ;;  %1313 = vxpose.xlu0.b32.start [1/2] (short) (narrow) %v1312_v32, 16  ;;  %1299 = vxpose.xlu1.b32.start [1/2] (short) (narrow) %v1298_v52, 16 }
 0x182   : > { %1315 = vxpose.xlu0.b32.end [2/2] (short) (narrow) %v1314_v35, 16  ;;  %1301 = vxpose.xlu1.b32.end [2/2] (short) (narrow) %v1300_v54, 16 }
 0x186   : > { %1327 = vxpose.xlu1.b32.start [1/2] (short) (narrow) %v1326_v38, 16 }
 0x18a   : > { %1329 = vxpose.xlu1.b32.end [2/2] (short) (narrow) %v1328_v41, 16 }
 0x1f6   : > { %v1288_v56 = vpop.trf.xlu0 }
 0x1f7   : > { %v1292_v57 = vunpack.i.h.bf16 %v1288_v56  ;;  %v1289_v59 = vunpack.i.l.bf16 %v1288_v56 }
 0x1fa   : > { %v1293_v58 = vpop.trf.xlu0 }
 0x1fb   : > { %v1297_v60 = vunpack.i.h.bf16 %v1293_v58  ;;  %v1294_v61 = vunpack.i.l.bf16 %v1293_v58 }
 0x1fd   : > { %v789_v62 = vpack.c.bf16 %v1294_v61, %v1289_v59  ;;  %v790_v63 = vpack.c.bf16 %v1297_v60, %v1292_v57 }
 0x1fe   : > { %v1302_v0 = vpop.trf.xlu1  ;;  %v1316_v1 = vpop.trf.xlu0 }
 0x1ff   : > { %1186 = vmatprep.mubr.msk.bf16.mxu0 %vm378_vm0, %v789_v62  ;;  %v1306_v2 = vunpack.i.h.bf16 %v1302_v0  ;;  %v1303_v3 = vunpack.i.l.bf16 %v1302_v0  ;;  %v1317_v5 = vunpack.i.l.bf16 %v1316_v1  ;;  %v1320_v15 = vunpack.i.h.bf16 %v1316_v1 }
 0x200   : > { %1187 = vmatmul.mubr.msk.bf16.vlgmr.msra.gmra.mrb[0].mxu0 %vm378_vm0, %v790_v63 }
 0x201   : > { %1195 = vmatpush3.bf16.msra.mxu0 %v1343_v55 }
 0x202   : > { %v1307_v4 = vpop.trf.xlu1  ;;  %v1321_v6 = vpop.trf.xlu0 }
 0x203   : > { %v1311_v7 = vunpack.i.h.bf16 %v1307_v4  ;;  %v1308_v8 = vunpack.i.l.bf16 %v1307_v4  ;;  %v1322_v9 = vunpack.i.l.bf16 %v1321_v6  ;;  %v1325_v16 = vunpack.i.h.bf16 %v1321_v6 }
 0x205   : > { %v791_v10 = vpack.c.bf16 %v1308_v8, %v1303_v3  ;;  %v792_v11 = vpack.c.bf16 %v1311_v7, %v1306_v2  ;;  %v785_v13 = vpack.c.bf16 %v1322_v9, %v1317_v5  ;;  %v786_v20 = vpack.c.bf16 %v1325_v16, %v1320_v15 }
 0x206   : > { %v1330_v12 = vpop.trf.xlu1 }
 0x207   : > { %1190 = vmatprep.mubr.msk.bf16.mxu0 %vm378_vm0, %v791_v10  ;;  %v1331_v14 = vunpack.i.l.bf16 %v1330_v12  ;;  %v1334_v21 = vunpack.i.h.bf16 %v1330_v12 }
 0x208   : > { %1191 = vmatmul.mubr.msk.bf16.gmra.mrb[4].mxu0 %vm378_vm0, %v792_v11 }
 0x209   : > { %1196 = vmatprep.mubr.msk.bf16.mxu0 %vm378_vm0, %v785_v13 }
 0x20a   : > { %v1335_v17 = vpop.trf.xlu1 }
 0x20b   : > { %v1336_v18 = vunpack.i.l.bf16 %v1335_v17  ;;  %v1339_v22 = vunpack.i.h.bf16 %v1335_v17 }
 0x20d   : > { %v787_v19 = vpack.c.bf16 %v1336_v18, %v1331_v14  ;;  %v788_v23 = vpack.c.bf16 %v1339_v22, %v1334_v21 }
 0x210   : > { %1197 = vmatmul.mubr.msk.bf16.vlgmr.msra.gmra.mrb[0].mxu0 %vm378_vm0, %v786_v20 }
 0x211   : > { %1200 = vmatprep.mubr.msk.bf16.mxu0 %vm378_vm0, %v787_v19 }
 0x218   : > { %1201 = vmatmul.mubr.msk.bf16.gmra.mrb[4].mxu0 %vm378_vm0, %v788_v23 }
 0x2e3   : > { %v1198_v24 = vpop.f32.mrb[0].mxu0 }
 0x2e4   : > { %v932_v25 = vpop.f32.mrb[1].mxu0  ;;  %v965_v29 = vand.u32 2147483647, %v1198_v24 }
 0x2e5   : > { %v963_v26 = vand.u32 2147483647, %v932_v25  ;;  %v1199_v27 = vpop.f32.mrb[2].mxu0 }
 0x2e6   : > { %v935_v28 = vpop.f32.mrb[3].mxu0  ;;  %v966_v32 = vand.u32 2147483647, %v1199_v27  ;;  %v975_v35 = vsel %vm971_vm1, %v965_v29, 0.0 }
 0x2e7   : > { %v964_v30 = vand.u32 2147483647, %v935_v28  ;;  %v972_v31 = vsel %vm971_vm1, %v963_v26, 0.0 }
 0x2e8   : > { %v977_v39 = vsel %vm971_vm1, %v966_v32, 0.0 }
 0x2e9   : > { %v973_v33 = vsel %vm971_vm1, %v964_v30, 0.0 }
 0x2ea   : > { %v974_v34 = vadd.f32 %v973_v33, %v972_v31 }
 0x2eb   : > { %v1202_v36 = vpop.f32.mrb[4].mxu0 }
 0x2ec   : > { %v976_v37 = vadd.f32 %v975_v35, %v974_v34  ;;  %v948_v38 = vpop.f32.mrb[5].mxu0  ;;  %v969_v44 = vand.u32 2147483647, %v1202_v36 }
 0x2ed   : > { %v967_v40 = vand.u32 2147483647, %v948_v38  ;;  %v1203_v41 = vpop.f32.mrb[6].mxu0 }
 0x2ee   : > { %v978_v42 = vadd.f32 %v977_v39, %v976_v37  ;;  %v951_v43 = vpop.f32.mrb[7].mxu0  ;;  %v970_v48 = vand.u32 2147483647, %v1203_v41  ;;  %v983_v51 = vsel %vm971_vm1, %v969_v44, 0.0 }
 0x2ef   : > { %v979_v45 = vsel %vm971_vm1, %v967_v40, 0.0  ;;  %v968_v46 = vand.u32 2147483647, %v951_v43 }
 0x2f0   : > { %v980_v47 = vadd.f32 %v979_v45, %v978_v42  ;;  %v985_v53 = vsel %vm971_vm1, %v970_v48, 0.0 }
 0x2f1   : > { %v981_v49 = vsel %vm971_vm1, %v968_v46, 0.0 }
 0x2f2   : > { %v982_v50 = vadd.f32 %v981_v49, %v980_v47 }
 0x2f4   : > { %v984_v52 = vadd.f32 %v983_v51, %v982_v50 }
 0x2f6   : > { %v986_v54 = vadd.f32 %v985_v53, %v984_v52 }
 0x2f8   : > { %987 = vadd.xlane.f32.xlu0 %v986_v54 }
 0x385   : > { %v988_v55 = vpop.xlane.xlu0 %987 }
 0x386   : > { %v989_v56 = vrot.slane %v988_v55, 4 }
 0x388   : > { %v990_v57 = vadd.f32 %v989_v56, %v988_v55 }
 0x38a   : > { %v991_v58 = vrot.slane %v990_v57, 2 }
 0x38c   : > { %v992_v59 = vadd.f32 %v991_v58, %v990_v57 }
 0x38e   : > { %v993_v60 = vrot.slane %v992_v59, 1 }
 0x390   : > { %v994_v61 = vadd.f32 %v993_v60, %v992_v59 }
 0x392   : > { %1212 = vpush %v994_v61 }
 0x3c3   : > { %s1213_s13 = spop %1212 }
 0x3c4   : > { %v996_v62 = vstv %s1213_s13 }
 0x3c5   : > { %998 = vst.msk [vmem:[%s340_s11] sm:$0x1] %vm997_vm2, %v996_v62 }
 0x3c6 PF: > { %p20_p12 = scmp.ge.s32.totalorder %s1644_s15, 4   ;;  %s1853_s21 = smov %s1498_s22 }
 0x3c7   : > { %s1854_s22 = smov %s1502_s23  ;;  %s1855_s23 = smov %s1655_s20 }
 0x3c8   : > { %s1856_s24 = smov %s1644_s15  ;;  %22 = sbr.rel (!%p20_p12) target bundleno = 6 (0x6), region = 105 }
 0x3cf   :  { %1016 = vsyncpa [#allocation3], 1 }
 0x3d0   :  { %1018 = vsyncpa [#allocation3 + $0x1], 1 }
 0x3d1   :  { %1019 = vsyncpa [#allocation5], 1 }
 0x3d2   :  { %1021 = vsyncpa [#allocation5 + $0x1], 1 }
 0x3d3   :  { %1022 = vsyncpa [#allocation8], 1 }

</bundles_post_ra>
